<compile_context>
chip_gen: v5e
topology: v5e:2x2
jax: 0.10.0
libtpu: 0.0.40
codegen_flags: <defaults>
</compile_context>

<pallas_src>
import jax
import jax.numpy as jnp
from jax.experimental import pallas as pl
from jax.experimental.pallas import tpu as pltpu


def _round_up(x, m):
    return ((x + m - 1) // m) * m


def _best_tile(n, target, base):
    """Largest t with t % base == 0, t | n and t <= max(target, base).

    `n` must be a multiple of `base`.
    """
    best = base
    t = base
    limit = min(n, max(target, base))
    while t <= limit:
        if n % t == 0:
            best = t
        t += base
    return best


def _pad_to(a, shape, dtype):
    a = a.astype(dtype)
    if tuple(a.shape) == tuple(shape):
        return a
    pad = [(0, s - d) for s, d in zip(shape, a.shape)]
    return jnp.pad(a, pad)


def _gcn_fused_kernel(x_ref, adj_ref, w_ref, b_ref, out_ref, acc_ref):
    # x_ref:   (TK, F)   bf16 k-th node slice of this batch element's features
    # adj_ref: (TM, TK)  (m, k) adjacency tile (f32 or bf16; cast in VMEM)
    # w_ref:   (F, H)    bf16 shared weight
    # b_ref:   (1, H)    f32 shared bias
    # out_ref: (TM, H)   output row tile (written once, at k == last)
    # acc_ref: (TM, H)   f32 accumulator, resident across the k axis
    k = pl.program_id(2)

    @pl.when(k == 0)
    def _init():
        acc_ref[...] = jnp.zeros_like(acc_ref)

    # support slice for this k-tile of source nodes: (TK, F) @ (F, H), f32 acc
    support = jnp.dot(x_ref[...], w_ref[...],
                      preferred_element_type=jnp.float32)
    adj_t = adj_ref[...].astype(jnp.bfloat16)
    acc_ref[...] += jnp.dot(adj_t, support.astype(jnp.bfloat16),
                            preferred_element_type=jnp.float32)

    @pl.when(k == pl.num_programs(2) - 1)
    def _epilogue():
        out = acc_ref[...] + b_ref[...]          # bias broadcasts over rows
        out_ref[...] = jnp.maximum(out, 0.0).astype(out_ref.dtype)


def _gcn_pre_kernel(sup_ref, adj_ref, b_ref, out_ref, acc_ref):
    # sup_ref: (TK, H)   bf16 precomputed support slice (x @ W)
    # adj_ref: (TM, TK)  adjacency tile (f32 or bf16; cast in VMEM)
    k = pl.program_id(2)

    @pl.when(k == 0)
    def _init():
        acc_ref[...] = jnp.zeros_like(acc_ref)

    adj_t = adj_ref[...].astype(jnp.bfloat16)
    acc_ref[...] += jnp.dot(adj_t, sup_ref[...],
                            preferred_element_type=jnp.float32)

    @pl.when(k == pl.num_programs(2) - 1)
    def _epilogue():
        out = acc_ref[...] + b_ref[...]
        out_ref[...] = jnp.maximum(out, 0.0).astype(out_ref.dtype)


def gcn_forward(x, adj, w, b, *, tm_target=512, tk_target=1024,
                compute_dtype=jnp.bfloat16, precompute_support=None):
    """x: (B, N, F), adj: (B, N, N), w: (F, H), b: (H,) -> (B, N, H)."""
    B, N, F = x.shape
    F_w, H = w.shape
    assert F_w == F, (F_w, F)
    out_dtype = x.dtype

    # ---- tile selection -----------------------------------------------------
    if N <= tm_target and N <= tk_target:
        # Small graph: one tile per batch element.
        n_pad = _round_up(N, 8)
        tm = tk = n_pad
    else:
        # Pad only to lane granularity (128) and choose the largest divisor
        # tiles under the targets -- avoids quadratic adj inflation.
        n_pad = _round_up(N, 128)
        tk = _best_tile(n_pad, tk_target, 128)
        tm = _best_tile(n_pad, tm_target, 8)

    # Megacore (v7x has 2 TensorCores): make sure the parallel grid axes have
    # at least 2 units of work when possible by splitting the row tile.
    if B * (n_pad // tm) < 2:
        tm_half = _best_tile(n_pad, max(tm // 2, 8), 8)
        if n_pad // tm_half >= 2:
            tm = tm_half

    needs_node_pad = (n_pad != N)

    # ---- operand preparation ------------------------------------------------
    if precompute_support is None:
        precompute_support = F > 128   # hoist x @ W when the feature dim is big

    b_c = b.reshape(1, H).astype(jnp.float32)

    # Adjacency dominates HBM traffic. Only copy it if padding is unavoidable
    # (and then fold the bf16 cast into that single copy); otherwise stream it
    # in its native dtype and cast tiles in VMEM.
    if needs_node_pad:
        adj_p = _pad_to(adj, (B, n_pad, n_pad), compute_dtype)
    else:
        adj_p = adj
    adj_bytes = jnp.dtype(adj_p.dtype).itemsize

    if precompute_support:
        # (B, N, F) @ (F, H) once in the wrapper (f32), then bf16 + pad.
        support = jnp.einsum("bnf,fh->bnh", x, w)
        sup_p = _pad_to(support, (B, n_pad, H), compute_dtype)
        kernel = _gcn_pre_kernel
        in_specs = [
            pl.BlockSpec((pl.Squeezed(), tk, H), lambda bi, mi, ki: (bi, ki, 0)),
            pl.BlockSpec((pl.Squeezed(), tm, tk), lambda bi, mi, ki: (bi, mi, ki)),
            pl.BlockSpec((1, H), lambda bi, mi, ki: (0, 0)),
        ]
        args = (sup_p, adj_p, b_c)
        feat_cols = H
    else:
        x_p = _pad_to(x, (B, n_pad, F), compute_dtype)
        w_c = w.astype(compute_dtype)
        kernel = _gcn_fused_kernel
        in_specs = [
            pl.BlockSpec((pl.Squeezed(), tk, F), lambda bi, mi, ki: (bi, ki, 0)),
            pl.BlockSpec((pl.Squeezed(), tm, tk), lambda bi, mi, ki: (bi, mi, ki)),
            pl.BlockSpec((F, H), lambda bi, mi, ki: (0, 0)),
            pl.BlockSpec((1, H), lambda bi, mi, ki: (0, 0)),
        ]
        args = (x_p, adj_p, w_c, b_c)
        feat_cols = F

    # ---- VMEM budget (double-buffered inputs/outputs + f32 accumulator) -----
    cbytes = jnp.dtype(compute_dtype).itemsize
    obytes = jnp.dtype(out_dtype).itemsize
    vmem_needed = (
        2 * tm * tk * adj_bytes           # adj tiles (dominant)
        + 2 * tk * feat_cols * cbytes     # x / support tiles
        + 2 * F * H * cbytes              # weight (fused path; negligible)
        + 2 * H * 4                       # bias (f32)
        + 2 * tm * H * obytes             # output tiles
        + tm * H * 4                      # f32 accumulator scratch
    )
    # 2x margin, >= 32 MiB, <= 48 MiB (headroom under v7x's 64 MiB physical).
    vmem_limit = int(min(max(2 * vmem_needed, 32 * 1024 * 1024),
                         48 * 1024 * 1024))

    grid = (B, n_pad // tm, n_pad // tk)

    out_p = pl.pallas_call(
        kernel,
        out_shape=jax.ShapeDtypeStruct((B, n_pad, H), out_dtype),
        grid_spec=pltpu.PrefetchScalarGridSpec(
            num_scalar_prefetch=0,
            grid=grid,
            in_specs=in_specs,
            out_specs=pl.BlockSpec((pl.Squeezed(), tm, H),
                                   lambda bi, mi, ki: (bi, mi, 0)),
            scratch_shapes=[pltpu.VMEM((tm, H), jnp.float32)],
        ),
        compiler_params=pltpu.CompilerParams(
            dimension_semantics=("parallel", "parallel", "arbitrary"),
            vmem_limit_bytes=vmem_limit,
        ),
    )(*args)

    if needs_node_pad:
        out_p = out_p[:, :N, :]
    return out_p


def gcn_reference(x, adj, w, b):
    # Plain-JAX f32 reference matching the PyTorch loop semantics.
    support = jnp.einsum("bnf,fh->bnh", x, w)
    out = jnp.einsum("bnm,bmh->bnh", adj, support) + b
    return jax.nn.relu(out)


def _run_case(key, B, N, NFEAT, NHID, **kwargs):
    kx, kadj, kw, kb = jax.random.split(key, 4)

    x = jax.random.normal(kx, (B, N, NFEAT), dtype=jnp.float32)

    # Symmetric, row-normalized adjacency (deterministic)
    a_raw = jax.random.uniform(kadj, (B, N, N), dtype=jnp.float32)
    adj = 0.5 * (a_raw + jnp.swapaxes(a_raw, -1, -2))
    adj = adj / jnp.sum(adj, axis=-1, keepdims=True)

    # GraphConvolution init: uniform(-stdv, stdv), stdv = 1/sqrt(nhid)
    stdv = 1.0 / (NHID ** 0.5)
    w = jax.random.uniform(kw, (NFEAT, NHID), dtype=jnp.float32,
                           minval=-stdv, maxval=stdv)
    b = jax.random.uniform(kb, (NHID,), dtype=jnp.float32,
                           minval=-stdv, maxval=stdv)

    out = jax.block_until_ready(gcn_forward(x, adj, w, b, **kwargs))
    ref = gcn_reference(x, adj, w, b)

    assert out.shape == (B, N, NHID), out.shape
    # bf16 operands with f32 accumulation -> loosened tolerance vs f32 ref.
    max_err = float(jnp.max(jnp.abs(out - ref)))
    assert jnp.allclose(out, ref, atol=2e-2, rtol=2e-2), \
        f"case N={N}: max err {max_err}"


if __name__ == "__main__":
    key = jax.random.PRNGKey(0)
    k1, k2, k3, k4, k5 = jax.random.split(key, 5)

    # Module's toy shapes: batch=2, nodes=16, nfeat=8, nhid=32 (single tile,
    # f32 adj streamed directly, no padding, no wrapper slice).
    _run_case(k1, B=2, N=16, NFEAT=8, NHID=32)
    # Non-multiple-of-8 node count exercises the padding (+ fold-in cast) path.
    _run_case(k2, B=2, N=20, NFEAT=8, NHID=32)
    # Multi-tile path: exercises K-axis accumulation + epilogue (grid 2x2x2).
    _run_case(k3, B=2, N=256, NFEAT=8, NHID=32, tm_target=128, tk_target=128)
    # B=1, ragged N: exercises the megacore row-tile split (grid 1x2x1).
    _run_case(k4, B=1, N=300, NFEAT=8, NHID=32)
    # Large feature dim: exercises the precomputed-support kernel.
    _run_case(k5, B=2, N=256, NFEAT=256, NHID=32)

    print("KERNEL_OK")
</pallas_src>

<mosaic_0001>
module attributes {stable_mosaic.version = 11 : i64} {
  func.func @_gcn_fused_kernel(%arg0: i32, %arg1: i32, %arg2: i32, %arg3: memref<1x16x8xbf16, #tpu.memory_space<vmem>>, %arg4: memref<1x16x16xf32, #tpu.memory_space<vmem>>, %arg5: memref<8x32xbf16, #tpu.memory_space<vmem>>, %arg6: memref<1x32xf32, #tpu.memory_space<vmem>>, %arg7: memref<1x16x32xf32, #tpu.memory_space<vmem>>, %arg8: memref<16x32xf32, #tpu.memory_space<vmem>>) attributes {dimension_semantics = [#tpu.dimension_semantics<parallel>, #tpu.dimension_semantics<parallel>, #tpu.dimension_semantics<arbitrary>], iteration_bounds = array<i64: 2, 1, 1>, scalar_prefetch = 0 : i64, scratch_operands = 1 : i64, tpu.core_type = #tpu.core_type<tc>, window_params = [{transform_indices = @transform_0, window_bounds = array<i64: 1, 16, 8>}, {transform_indices = @transform_1, window_bounds = array<i64: 1, 16, 16>}, {pipeline_mode = #tpu.pipeline_mode<synchronous>, transform_indices = @transform_2, window_bounds = array<i64: 8, 32>}, {pipeline_mode = #tpu.pipeline_mode<synchronous>, transform_indices = @transform_3, window_bounds = array<i64: 1, 32>}, {transform_indices = @transform_4, window_bounds = array<i64: 1, 16, 32>}]} {
    %c0_i32 = arith.constant 0 : i32
    %0 = arith.cmpi eq, %arg2, %c0_i32 : i32
    %1 = arith.extui %0 : i1 to i32
    %c0_i32_0 = arith.constant 0 : i32
    %2 = arith.cmpi ne, %1, %c0_i32_0 : i32
    scf.if %2 {
      %cst_15 = arith.constant 0.000000e+00 : f32
      %18 = vector.broadcast %cst_15 : f32 to vector<16x32xf32>
      %c0_16 = arith.constant 0 : index
      %c0_17 = arith.constant 0 : index
      %19 = vector.load %arg8[%c0_16, %c0_17] : memref<16x32xf32, #tpu.memory_space<vmem>>, vector<16x32xf32>
      tpu.vector_store %arg8[%c0_16, %c0_17], %18 {strides = array<i32>} : memref<16x32xf32, #tpu.memory_space<vmem>>, vector<16x32xf32>,
    } else {
    }
    %c0 = arith.constant 0 : index
    %c0_1 = arith.constant 0 : index
    %c0_2 = arith.constant 0 : index
    %3 = vector.load %arg3[%c0, %c0_1, %c0_2] : memref<1x16x8xbf16, #tpu.memory_space<vmem>>, vector<1x16x8xbf16>
    %4 = vector.shape_cast %3 : vector<1x16x8xbf16> to vector<16x8xbf16>
    %c0_3 = arith.constant 0 : index
    %c0_4 = arith.constant 0 : index
    %5 = vector.load %arg5[%c0_3, %c0_4] : memref<8x32xbf16, #tpu.memory_space<vmem>>, vector<8x32xbf16>
    %cst = arith.constant dense<0.000000e+00> : vector<16x32xf32>
    %6 = tpu.matmul %4, %5, %cst {dimension_numbers = #tpu.dot_dimension_numbers<[1], [0], [0], [1], [0, 0, 1, 1], [], []>} : vector<16x8xbf16>, vector<8x32xbf16>, vector<16x32xf32> -> vector<16x32xf32>
    %c0_5 = arith.constant 0 : index
    %c0_6 = arith.constant 0 : index
    %c0_7 = arith.constant 0 : index
    %7 = vector.load %arg4[%c0_5, %c0_6, %c0_7] : memref<1x16x16xf32, #tpu.memory_space<vmem>>, vector<1x16x16xf32>
    %8 = vector.shape_cast %7 : vector<1x16x16xf32> to vector<16x16xf32>
    %9 = arith.truncf %8 : vector<16x16xf32> to vector<16x16xbf16>
    %c0_8 = arith.constant 0 : index
    %c0_9 = arith.constant 0 : index
    %10 = vector.load %arg8[%c0_8, %c0_9] : memref<16x32xf32, #tpu.memory_space<vmem>>, vector<16x32xf32>
    %11 = arith.truncf %6 : vector<16x32xf32> to vector<16x32xbf16>
    %cst_10 = arith.constant dense<0.000000e+00> : vector<16x32xf32>
    %12 = tpu.matmul %9, %11, %cst_10 {dimension_numbers = #tpu.dot_dimension_numbers<[1], [0], [0], [1], [0, 0, 1, 1], [], []>} : vector<16x16xbf16>, vector<16x32xbf16>, vector<16x32xf32> -> vector<16x32xf32>
    %13 = arith.addf %10, %12 : vector<16x32xf32>
    %c0_11 = arith.constant 0 : index
    %c0_12 = arith.constant 0 : index
    %14 = vector.load %arg8[%c0_11, %c0_12] : memref<16x32xf32, #tpu.memory_space<vmem>>, vector<16x32xf32>
    tpu.vector_store %arg8[%c0_11, %c0_12], %13 {strides = array<i32>} : memref<16x32xf32, #tpu.memory_space<vmem>>, vector<16x32xf32>,
    %c0_i32_13 = arith.constant 0 : i32
    %15 = arith.cmpi eq, %arg2, %c0_i32_13 : i32
    %16 = arith.extui %15 : i1 to i32
    %c0_i32_14 = arith.constant 0 : i32
    %17 = arith.cmpi ne, %16, %c0_i32_14 : i32
    scf.if %17 {
      %c0_15 = arith.constant 0 : index
      %c0_16 = arith.constant 0 : index
      %18 = vector.load %arg8[%c0_15, %c0_16] : memref<16x32xf32, #tpu.memory_space<vmem>>, vector<16x32xf32>
      %c0_17 = arith.constant 0 : index
      %c0_18 = arith.constant 0 : index
      %19 = vector.load %arg6[%c0_17, %c0_18] : memref<1x32xf32, #tpu.memory_space<vmem>>, vector<1x32xf32>
      %20 = vector.broadcast %19 : vector<1x32xf32> to vector<16x32xf32>
      %21 = arith.addf %18, %20 : vector<16x32xf32>
      %cst_19 = arith.constant 0.000000e+00 : f32
      %22 = vector.broadcast %cst_19 : f32 to vector<16x32xf32>
      %23 = arith.maximumf %21, %22 : vector<16x32xf32>
      %c0_20 = arith.constant 0 : index
      %c0_21 = arith.constant 0 : index
      %c0_22 = arith.constant 0 : index
      %24 = vector.load %arg7[%c0_20, %c0_21, %c0_22] : memref<1x16x32xf32, #tpu.memory_space<vmem>>, vector<1x16x32xf32>
      %25 = vector.shape_cast %24 : vector<1x16x32xf32> to vector<16x32xf32>
      %26 = vector.shape_cast %23 : vector<16x32xf32> to vector<1x16x32xf32>
      tpu.vector_store %arg7[%c0_20, %c0_21, %c0_22], %26 {strides = array<i32>} : memref<1x16x32xf32, #tpu.memory_space<vmem>>, vector<1x16x32xf32>,
    } else {
    }
    return
  }
  func.func @transform_0(%arg0: i32, %arg1: i32, %arg2: i32) -> (i32, i32, i32) {
    %c0_i32 = arith.constant 0 : i32
    %c0_i32_0 = arith.constant 0 : i32
    return %arg0, %arg2, %c0_i32 : i32, i32, i32
  }
  func.func @transform_1(%arg0: i32, %arg1: i32, %arg2: i32) -> (i32, i32, i32) {
    %c0_i32 = arith.constant 0 : i32
    return %arg0, %arg1, %arg2 : i32, i32, i32
  }
  func.func @transform_2(%arg0: i32, %arg1: i32, %arg2: i32) -> (i32, i32) {
    %c0_i32 = arith.constant 0 : i32
    %c0_i32_0 = arith.constant 0 : i32
    %c0_i32_1 = arith.constant 0 : i32
    return %c0_i32, %c0_i32_0 : i32, i32
  }
  func.func @transform_3(%arg0: i32, %arg1: i32, %arg2: i32) -> (i32, i32) {
    %c0_i32 = arith.constant 0 : i32
    %c0_i32_0 = arith.constant 0 : i32
    %c0_i32_1 = arith.constant 0 : i32
    return %c0_i32, %c0_i32_0 : i32, i32
  }
  func.func @transform_4(%arg0: i32, %arg1: i32, %arg2: i32) -> (i32, i32, i32) {
    %c0_i32 = arith.constant 0 : i32
    %c0_i32_0 = arith.constant 0 : i32
    return %arg0, %arg1, %c0_i32 : i32, i32, i32
  }
}

</mosaic_0001>

<bundles_post_ra>
// kernel: tpu_custom_call.1
= control target key start
LH: loop header
LB: loop body
LE: loop exit
PB: predicated region body
PF: predicated region fallthrough
CT: control target
= control target key end

     0   :  { %9 = vsyncpa [#allocation4], 0  ;;  %s873_s0 = inlined_call_operand.vmem [shape: bf16[2,16,8], index: 0, kind: input, shape index: {}]   ;;  %s874_s1 = inlined_call_operand.hbm [shape: f32[2,16,16], index: 1, kind: input, shape index: {}]   ;;  %s875_s2 = inlined_call_operand.vmem [shape: bf16[8,32], index: 2, kind: input, shape index: {}]   ;;  %s876_s3 = inlined_call_operand.vmem [shape: f32[1,32], index: 3, kind: input, shape index: {}]   ;;  %s877_s4 = inlined_call_operand.hbm [shape: f32[2,16,32], index: 4, kind: output, shape index: {}]  }
   0x1   :  { %11 = vsyncpa [#allocation4 + $0x1], 0 }
   0x2   :  { %12 = vsyncpa [#allocation5], 0 }
   0x3   :  { %14 = vsyncpa [#allocation5 + $0x1], 0  ;;  %s732_s15 = smov 0   ;;  %s734_s16 = smov 0  }
   0x4   :  { %s736_s17 = smov 0   ;;  %s738_s18 = smov 0  }
   0x5   :  { %s740_s19 = smov 0   ;;  %s742_s20 = smov 0  }
   0x6 LB: > { %s493_s21 = sadd.s32 4294967295, %s700_s20   ;;  %s494_s22 = sadd.s32 4294967294, %s700_s20   ;;  %s700_s20 = sphi %s742_s20, %s20_s20   ;;  %s696_s19 = sphi %s740_s19, %s886_s19   ;;  %s692_s18 = sphi %s738_s18, %s885_s18   ;;  %s688_s17 = sphi %s736_s17, %s884_s17   ;;  %s684_s16 = sphi %s734_s16, %s883_s16   ;;  %s680_s15 = sphi %s732_s15, %s882_s15  }
   0x7   : > { %s39_s23 = sadd.s32 1, %s696_s19  ;;  %s78_s24 = sadd.s32 1, %s688_s17 }
   0x8   : > { %p41_p0 = scmp.ge.s32.totalorder %s39_s23, 2  ;;  %p85_p1 = scmp.ne.s32.totalorder %s688_s17, %s684_s16 }
   0x9   : > { %p86_p2 = scmp.eq.s32.totalorder %s700_s20, 0  ;;  %p91_p3 = scmp.ne.s32.totalorder %s684_s16, %s680_s15 }
   0xa   : > { %s888_s23 = smov (%p41_p0, %s39_s23), 0  ;;  %p92_p5 = scmp.eq.s32.totalorder %s493_s21, 0 }
   0xb   : > { %p773_p4 = por %p86_p2, %p85_p1  ;;  %s71_s26 = ssub.s32 %s696_s19, %s888_s23 }
   0xc   : > { %p159_p6 = scmp.eq.s32.totalorder %s493_s21, 1  ;;  %p76_p7 = scmp.eq.s32.totalorder %s71_s26, 0 }
   0xd   : > { %p779_p8 = por %p92_p5, %p91_p3  ;;  %p165_p10 = scmp.eq.s32.totalorder %s494_s22, 1 }
   0xe   : > { %p783_p9 = por %p159_p6, %p85_p1  ;;  %p496_p12 = scmp.ge.s32.totalorder %s700_s20, 2 }
   0xf   : > { %s788_s29 = scalar_select %p76_p7, %s688_s17, %s78_s24  }
  0x10   : > { %p790_p11 = por %p165_p10, %p91_p3  ;;  %p532_p13 = scmp.lt.s32.totalorder %s700_s20, 2 }
  0x11   : > { %s204_s5 = sand.u32 1, %s688_s17   ;;  %s516_s7 = sshll.u32 %s696_s19, 4 }
  0x12   : > { %s497_s6 = sshll.u32 %s204_s5, 4  ;;  %s216_s10 = scalar_lea.hbm %s874_s1, %s516_s7 }
  0x13   : > { %s208_s11 = scalar_lea.vmem [#allocation3], %s497_s6  ;;  %s217_s13 = sshll.u32 %s216_s10, 4  ;;  %s218_s13 = int_to_ptr.hbm [resolvable:$true] %s217_s13 }
  0x14   : > { %s219_s12 = sshll.u32 %s208_s11, 4  ;;  %p525_p0 = pnand %p532_p13, %p773_p4  ;;  %s220_s12 = int_to_ptr.vmem [resolvable:$true] %s219_s12 }
  0x15   : > { %p500_p1 = scmp.ge.s32.totalorder %s700_s20, 1  ;;  %s205_s14 = scalar_lea.sflag [#allocation4], %s204_s5 }
  0x16   : > { %s702_s21 = smov 128   ;;  %s703_s22 = smov 8  }
  0x17   : > { %527 = dma.hbm_to_vmem [thread:$0]  (!%p525_p0), %s218_s13, 256, %s220_s12, %s205_s14, %s702_s21, %s702_s21, %s703_s22  }
  0x18   : > { %p227_p2 = scmp.lt.s32.totalorder %s700_s20, 3 }
  0x1a   : > { %p228_p3 = pnand %p500_p1, %p227_p2 }
  0x1b   : > { %s806_s24 = sand.u32 (!%p228_p3), 1, %s684_s16  }
  0x1c   : > { %231 = sbr.rel (%p228_p3) target bundleno = 332 (0x14c), region = 36  ;;  %s501_s26 = sshll.u32 (!%p228_p3), %s806_s24, 4 }
  0x1d   : > { %s234_s6 = scalar_lea.sflag (!%p228_p3), [#allocation4], %s806_s24  ;;  %s237_s25 = scalar_lea.vmem (!%p228_p3), [#allocation3], %s501_s26 }
  0x21   : > { %671 = dma.done.wait (%p779_p8), %s234_s6, 256  }
  0x22   : > { %673 = vsyncadd (%p779_p8), %s234_s6, 4294967040  ;;  %p273_p4 = scmp.lt.s32.totalorder %s692_s18, 1  ;;  %vm304_vm0 = vcmask 1043456   ;;  %v294_v0 = vld [vmem:[%s875_s2] sm:$0xf]  ;;  %vm300_vm1 = vcmask 64512  }
  0x23   : > { %v306_v1 = vsel %vm304_vm0, %v294_v0, 0  ;;  %vm289_vm2 = vcmask 261120   ;;  %v704_v3 = vmov 0.0   ;;  %v322_v5 = vld [vmem:[%s237_s25] sm:$0xff]  ;;  %v323_v6 = vld [vmem:[%s237_s25 + $0x8] sm:$0xff]  ;;  %vm328_vm3 = vcmask 130048  }
  0x24   : > { %s274_s5 = scalar_select %p273_p4, %s692_s18, 1  ;;  %315 = vmatpush.bf16.msra.mxu0 %v306_v1  ;;  %290 = vst.msk [vmem:[#allocation2] sm:$0xff] %vm289_vm2, %v704_v3  ;;  %v324_v9 = vpack.c.bf16 %v323_v6, %v322_v5  ;;  %v587_v14 = vld [vmem:[%s876_s3] ss:$0 sm:$0xff] }
  0x25   : > { %291 = vst.msk [vmem:[#allocation2 + $0x8] sm:$0xff] %vm289_vm2, %v704_v3  ;;  %s519_s14 = sshll.u32 %s692_s18, 4  ;;  %s271_s25 = scalar_lea.vmem [#allocation6], %s501_s26 }
  0x26   : > { %s517_s7 = sshll.u32 %s274_s5, 3  ;;  %s380_s6 = scalar_lea.hbm %s877_s4, %s519_s14 }
  0x27   : > { %s280_s10 = scalar_lea.vmem %s873_s0, %s517_s7  ;;  %s381_s5 = sshll.u32 %s271_s25, 4  ;;  %s382_s5 = int_to_ptr.vmem [resolvable:$true] %s381_s5 }
  0x28   : > { %v518_v2 = vld [vmem:[%s280_s10] sm:$0xff]  ;;  %s383_s7 = sshll.u32 %s380_s6, 4  ;;  %s367_s18 = scalar_lea.sflag [#allocation5], %s806_s24  ;;  %s384_s7 = int_to_ptr.hbm [resolvable:$true] %s383_s7 }
  0x29   : > { %509 = vmatmul.msk.bf16.vlgmr.msra.gmra.mxu0 %vm300_vm1, %v518_v2  ;;  %s632_s8 = sshra.s32 %s384_s7, 4  ;;  %s638_s11 = scalar_lea.hbm %s877_s4, 32  ;;  %s633_s8 = int_to_ptr.hbm [resolvable:$true] %s632_s8 }
  0x2a   : > { %s634_s9 = scalar_lea.hbm %s633_s8, 16  ;;  %p639_p8 = scmp.lt.s32.totalorder %s633_s8, %s877_s4 }
  0x2b   : > { %v325_v10 = vld [vmem:[#allocation2] sm:$0xff]  ;;  %p635_p5 = scmp.ne.s32.totalorder %s633_s8, %s634_s9  ;;  %p640_p10 = scmp.lt.s32.totalorder %s638_s11, %s634_s9 }
  0x2c   : > { %v326_v13 = vld [vmem:[#allocation2 + $0x8] sm:$0xff] }
  0x2d   : > { %p636_p6 = pnand %p635_p5, %p783_p9  ;;  %p641_p13 = por %p640_p10, %p639_p8 }
  0x2f   : > { %p637_p7 = pneg %p636_p6 }
  0x31   : > { %p642_p0 = pnand %p641_p13, %p637_p7 }
  0xa6   : > { %v317_v4 = vpop.f32.mrf.mxu0 }
  0xae   : > { %v319_v7 = vpop.f32.mrf.mxu0 }
  0xaf   : > { %v327_v8 = vpack.c.bf16 %v319_v7, %v317_v4 }
  0xb1   : > { %339 = vmatpush.bf16.msra.mxu1 %v327_v8 }
  0xb4   : > { %510 = vmatmul.msk.bf16.vlgmr.msra.gmra.mxu1 %vm328_vm3, %v324_v9 }
 0x131   : > { %v341_v11 = vpop.f32.mrf.mxu1 }
 0x132   : > { %v346_v12 = vadd.f32 %v341_v11, %v325_v10 }
 0x134   : > { %349 = vst.msk [vmem:[#allocation2] sm:$0xff] %vm289_vm2, %v346_v12 }
 0x139   : > { %v343_v15 = vpop.f32.mrf.mxu1 }
 0x13a   : > { %v347_v16 = vadd.f32 %v343_v15, %v326_v13 }
 0x13b   : > { %v354_v17 = vld [vmem:[#allocation2] sm:$0xff] }
 0x13c   : > { %350 = vst.msk [vmem:[#allocation2 + $0x8] sm:$0xff] %vm289_vm2, %v347_v16  ;;  %v360_v18 = vadd.f32 %v587_v14, %v354_v17 }
 0x13e   : > { %v362_v19 = vmax.f32 %v360_v18, 0.0 }
 0x140   : > { %364 = vst.msk [vmem:[%s271_s25] sm:$0xff] %vm289_vm2, %v362_v19 }
 0x143   : > { %v355_v20 = vld [vmem:[#allocation2 + $0x8] sm:$0xff] }
 0x144   : > { %v361_v21 = vadd.f32 %v587_v14, %v355_v20 }
 0x146   : > { %v363_v22 = vmax.f32 %v361_v21, 0.0 }
 0x148   : > { %365 = vst.msk [vmem:[%s271_s25 + $0x8] sm:$0xff] %vm289_vm2, %v363_v22 }
 0x149   : > { %645 = shalt.err (!%p642_p0)
}
 0x14a   : > { %s705_s24 = smov 128   ;;  %s706_s13 = smov 8  }
 0x14b   : > { %522 = dma.vmem_to_hbm [thread:$0]  (%p783_p9), %s382_s5, 256, %s384_s7, %s367_s18, %s705_s24, %s705_s24, %s706_s13  }
 0x14c PF: > { %s398_s14 = sand.u32 1, %s680_s15   ;;  %p529_p1 = pnand %p496_p12, %p790_p11 }
 0x14d   : > { %s399_s21 = scalar_lea.sflag [#allocation5], %s398_s14 }
 0x14e   : > { %p530_p2 = pneg %p529_p1 }
 0x150   : > { %675 = dma.done.wait (%p530_p2), %s399_s21, 256  }
 0x151   : > { %677 = vsyncadd (%p530_p2), %s399_s21, 4294967040  ;;  %s20_s20 = sadd.s32 1, %s700_s20   ;;  %s882_s15 = smov %s684_s16 }
 0x152   : > { %p17_p3 = scmp.ge.s32.totalorder %s20_s20, 4   ;;  %s883_s16 = smov %s688_s17 }
 0x153   : > { %s884_s17 = smov %s788_s29  ;;  %s885_s18 = smov %s696_s19 }
 0x154   : > { %s886_s19 = smov %s888_s23  ;;  %19 = sbr.rel (!%p17_p3) target bundleno = 6 (0x6), region = 92 }
 0x159   :  { %405 = vsyncpa [#allocation4], 1 }
 0x15a   :  { %407 = vsyncpa [#allocation4 + $0x1], 1 }
 0x15b   :  { %408 = vsyncpa [#allocation5], 1 }
 0x15c   :  { %410 = vsyncpa [#allocation5 + $0x1], 1 }

</bundles_post_ra>
